<compile_context>
chip_gen: v7x
topology: tpu7x:2x2x1
jax: 0.10.0
libtpu: 0.0.40
codegen_flags: <defaults>
</compile_context>

<pallas_src>
import jax
import jax.numpy as jnp
from jax.experimental import pallas as pl
from jax.experimental.pallas import tpu as pltpu


EPS = 1e-5
_LANE = 128
_SUBLANE = 8


def _vmem_capacity_bytes():
    try:
        info = pltpu.get_tpu_info()
        cap = getattr(info, "vmem_capacity_bytes", None)
        if cap:
            return int(cap)
    except Exception:
        pass
    return 64 * 1024 * 1024  # conservative fallback (v7x-sized)


def _make_kernel(n_true, tile_n, ragged):
    """Build the kernel with true row count / tile size baked in at trace time."""
    inv_n = 1.0 / float(n_true)

    def kernel(x_ref, gamma_ref, beta_ref, o_ref, s1_ref, s2_ref, k_ref):
        # grid = (h_tiles, phase, n_tiles)
        phase = pl.program_id(1)
        n_idx = pl.program_id(2)
        n_last = pl.num_programs(2) - 1

        # ---- phase 0, first N tile: capture per-column shift, reset sums ----
        @pl.when(jnp.logical_and(phase == 0, n_idx == 0))
        def _():
            # Row 0 of the first tile is always a valid row; used as a
            # per-column shift to avoid E[x^2] - mean^2 cancellation.
            k_ref[...] = x_ref[0:1, :].astype(jnp.float32)
            s1_ref[...] = jnp.zeros_like(s1_ref)   # running sum of (x - k)
            s2_ref[...] = jnp.zeros_like(s2_ref)   # running sum of (x - k)^2

        def accumulate(mask_rows):
            x = x_ref[...].astype(jnp.float32)
            xc = x - k_ref[...]
            if mask_rows:
                # Only the ragged last N tile pays for the iota/compare/select.
                row = (jax.lax.broadcasted_iota(jnp.int32, xc.shape, 0)
                       + n_idx * tile_n)
                xc = jnp.where(row < n_true, xc, 0.0)
            s1_ref[...] += jnp.sum(xc, axis=0, keepdims=True)
            s2_ref[...] += jnp.sum(xc * xc, axis=0, keepdims=True)

        if ragged:
            @pl.when(jnp.logical_and(phase == 0, n_idx != n_last))
            def _():
                accumulate(False)

            @pl.when(jnp.logical_and(phase == 0, n_idx == n_last))
            def _():
                accumulate(True)
        else:
            @pl.when(phase == 0)
            def _():
                accumulate(False)

        # ---- phase 0, last N tile: fold stats + affine into scale / shift ---
        @pl.when(jnp.logical_and(phase == 0, n_idx == n_last))
        def _():
            m_c = s1_ref[...] * inv_n                               # E[x - k]
            var = jnp.maximum(s2_ref[...] * inv_n - m_c * m_c, 0.0)  # biased var
            mean = k_ref[...] + m_c
            scale = gamma_ref[...].astype(jnp.float32) * jax.lax.rsqrt(var + EPS)
            s1_ref[...] = scale                                      # reuse as scale
            s2_ref[...] = beta_ref[...].astype(jnp.float32) - mean * scale  # shift

        # ---- phase 1: out = x * scale + shift (one mul + one add / elem) ----
        @pl.when(phase == 1)
        def _():
            x = x_ref[...].astype(jnp.float32)
            o_ref[...] = (x * s1_ref[...] + s2_ref[...]).astype(o_ref.dtype)

    return kernel


def graph_norm_with_rate(x, params, rate_b=None, *, _vmem_budget_bytes=None):
    """x: (N, H).  rate_b: python/jnp scalar or None."""
    n, h = x.shape
    weight = params["weight"]            # (H,)
    bias = params["bias"]                # (H,)

    if rate_b is not None:
        # Linear(1, H) on a scalar == elementwise rate * W[:, 0] + b.
        rate = jnp.asarray(rate_b, jnp.float32).reshape(())
        gamma = weight + (rate * params["rate_scale_w"][:, 0] + params["rate_scale_b"])
        beta = bias + (rate * params["rate_bias_w"][:, 0] + params["rate_bias_b"])
    else:
        gamma = weight
        beta = bias

    gamma = gamma.reshape(1, h).astype(jnp.float32)
    beta = beta.reshape(1, h).astype(jnp.float32)

    itemsize = jnp.dtype(x.dtype).itemsize

    # --- H tile: lane-dense when H % 128 == 0, else a single full-width tile.
    #     Prefer >= 2 H tiles so the "parallel" H axis shards both v7x cores.
    if h % _LANE != 0:
        tile_h = h
    else:
        tile_h = _LANE
        for cand in (512, 256, 128):
            if h % cand == 0 and h // cand >= 2:
                tile_h = cand
                break

    # --- N tile from a generation-aware VMEM budget ------------------------
    vmem_cap = _vmem_capacity_bytes()
    if _vmem_budget_bytes is not None:
        budget = int(_vmem_budget_bytes)
    else:
        # ~48 MiB of live buffers on v7x (64 MiB VMEM), up to 96 MiB on v5e/v6e.
        budget = min((vmem_cap * 3) // 4, 96 * 1024 * 1024)

    # Live bytes per row of tile: x double-buffer + out double-buffer.
    bytes_per_row = 4 * tile_h * itemsize
    if bytes_per_row * n <= budget:
        # Resident strip: single N tile; x block index identical in both
        # phases -> Pallas skips the second HBM read of x.
        tile_n = n
    else:
        tile_n = max(_SUBLANE, (budget // bytes_per_row) // _SUBLANE * _SUBLANE)
        tile_n = min(tile_n, n)

    n_tiles = pl.cdiv(n, tile_n)
    ragged = (n % tile_n) != 0
    last = n_tiles - 1

    grid = (h // tile_h, 2, n_tiles)

    # x streamed forward in phase 0, reversed in phase 1 (first phase-1 block
    # == last phase-0 block -> fetch skipped across the phase boundary).
    x_map = lambda hb, p, nb: ((1 - p) * nb + p * (last - nb), hb)
    gb_map = lambda hb, p, nb: (0, hb)
    # Output block index frozen at `last` during phase 0 (never written, never
    # flushed) and follows the reversed phase-1 order, so every writeback
    # flushes a fully written block.
    out_map = lambda hb, p, nb: ((1 - p) * last + p * (last - nb), hb)

    passes = 2 if n_tiles == 1 else 3
    cost = pl.CostEstimate(
        flops=6 * n * h,
        transcendentals=h,
        bytes_accessed=passes * n * h * itemsize,
    )

    live_bytes = 4 * tile_n * tile_h * itemsize + 16 * tile_h * itemsize
    vmem_limit = int(min(max(32 * 1024 * 1024, live_bytes + 8 * 1024 * 1024),
                         vmem_cap - 2 * 1024 * 1024))

    out = pl.pallas_call(
        _make_kernel(n, tile_n, ragged),
        out_shape=jax.ShapeDtypeStruct((n, h), x.dtype),
        grid_spec=pltpu.PrefetchScalarGridSpec(
            num_scalar_prefetch=0,
            grid=grid,
            in_specs=[
                pl.BlockSpec((tile_n, tile_h), x_map),
                pl.BlockSpec((1, tile_h), gb_map),
                pl.BlockSpec((1, tile_h), gb_map),
            ],
            out_specs=pl.BlockSpec((tile_n, tile_h), out_map),
            scratch_shapes=[
                pltpu.VMEM((1, tile_h), jnp.float32),   # sum(x-k)   -> scale
                pltpu.VMEM((1, tile_h), jnp.float32),   # sum((x-k)^2) -> shift
                pltpu.VMEM((1, tile_h), jnp.float32),   # per-column shift k
            ],
        ),
        compiler_params=pltpu.CompilerParams(
            dimension_semantics=("parallel", "arbitrary", "arbitrary"),
            vmem_limit_bytes=vmem_limit,
        ),
        cost_estimate=cost,
    )(x, gamma, beta)

    return out


def init_params(hidden_dim, key):
    """Deterministic init mirroring the PyTorch module's parameter shapes."""
    k1, k2, k3, k4 = jax.random.split(key, 4)
    # nn.Linear(1, hidden_dim) default init: U(-1/sqrt(in_features), +), in_features=1.
    bound = 1.0
    return {
        "weight": jnp.ones((hidden_dim,), jnp.float32),
        "bias": jnp.zeros((hidden_dim,), jnp.float32),
        "rate_scale_w": jax.random.uniform(k1, (hidden_dim, 1), jnp.float32, -bound, bound),
        "rate_scale_b": jax.random.uniform(k2, (hidden_dim,), jnp.float32, -bound, bound),
        "rate_bias_w": jax.random.uniform(k3, (hidden_dim, 1), jnp.float32, -bound, bound),
        "rate_bias_b": jax.random.uniform(k4, (hidden_dim,), jnp.float32, -bound, bound),
    }


def _reference(x, params, rate_b=None):
    mean = jnp.mean(x, axis=0, keepdims=True)
    var = jnp.mean((x - mean) ** 2, axis=0, keepdims=True)   # biased, matches torch unbiased=False
    x_norm = (x - mean) / jnp.sqrt(var + EPS)
    if rate_b is not None:
        rate = jnp.asarray(rate_b, x.dtype).reshape(1, 1)
        gamma = params["weight"][None, :] + rate @ params["rate_scale_w"].T + params["rate_scale_b"]
        beta = params["bias"][None, :] + rate @ params["rate_bias_w"].T + params["rate_bias_b"]
    else:
        gamma = params["weight"][None, :]
        beta = params["bias"][None, :]
    return x_norm * gamma + beta


if __name__ == "__main__":
    key = jax.random.PRNGKey(0)
    k_x, k_p, k_x2, k_p2 = jax.random.split(key, 4)

    # Small shape implied by the module: x = (num_nodes, hidden_dim).
    num_nodes, hidden_dim = 8, 32
    x = jax.random.normal(k_x, (num_nodes, hidden_dim), jnp.float32)
    params = init_params(hidden_dim, k_p)
    rate_b = 0.37

    # With rate_b
    out = jax.block_until_ready(graph_norm_with_rate(x, params, rate_b))
    ref = _reference(x, params, rate_b)
    assert jnp.allclose(out, ref, atol=1e-4, rtol=1e-4), "mismatch (rate_b path)"

    # Without rate_b
    out2 = jax.block_until_ready(graph_norm_with_rate(x, params, None))
    ref2 = _reference(x, params, None)
    assert jnp.allclose(out2, ref2, atol=1e-4, rtol=1e-4), "mismatch (no-rate path)"

    # Larger shape: resident-strip fast path (x read once), 2 H tiles.
    n3, h3 = 1000, 256
    x3 = jax.random.normal(k_x2, (n3, h3), jnp.float32)
    params3 = init_params(h3, k_p2)
    out3 = jax.block_until_ready(graph_norm_with_rate(x3, params3, rate_b))
    ref3 = _reference(x3, params3, rate_b)
    assert jnp.allclose(out3, ref3, atol=1e-4, rtol=1e-4), "mismatch (resident path)"

    # Same data with a tiny forced VMEM budget: exercises the streamed
    # multi-N-tile path, the ragged last-tile mask and the reversed phase-1
    # traversal.
    out4 = jax.block_until_ready(
        graph_norm_with_rate(x3, params3, rate_b, _vmem_budget_bytes=1 << 20))
    assert jnp.allclose(out4, ref3, atol=1e-4, rtol=1e-4), "mismatch (tiled/ragged path)"

    print("KERNEL_OK")
</pallas_src>

<mosaic_0001>
module attributes {stable_mosaic.version = 11 : i64} {
  func.func @kernel(%arg0: i32, %arg1: i32, %arg2: i32, %arg3: memref<8x32xf32, #tpu.memory_space<vmem>>, %arg4: memref<1x32xf32, #tpu.memory_space<vmem>>, %arg5: memref<1x32xf32, #tpu.memory_space<vmem>>, %arg6: memref<8x32xf32, #tpu.memory_space<vmem>>, %arg7: memref<1x32xf32, #tpu.memory_space<vmem>>, %arg8: memref<1x32xf32, #tpu.memory_space<vmem>>, %arg9: memref<1x32xf32, #tpu.memory_space<vmem>>) attributes {dimension_semantics = [#tpu.dimension_semantics<parallel>, #tpu.dimension_semantics<arbitrary>, #tpu.dimension_semantics<arbitrary>], iteration_bounds = array<i64: 1, 2, 1>, scalar_prefetch = 0 : i64, scratch_operands = 3 : i64, tpu.core_type = #tpu.core_type<tc>, window_params = [{transform_indices = @transform_0, window_bounds = array<i64: 8, 32>}, {transform_indices = @transform_1, window_bounds = array<i64: 1, 32>}, {transform_indices = @transform_2, window_bounds = array<i64: 1, 32>}, {transform_indices = @transform_3, window_bounds = array<i64: 8, 32>}]} {
    %c0_i32 = arith.constant 0 : i32
    %0 = arith.cmpi eq, %arg1, %c0_i32 : i32
    %c0_i32_0 = arith.constant 0 : i32
    %1 = arith.cmpi eq, %arg2, %c0_i32_0 : i32
    %2 = arith.andi %0, %1 : i1
    %3 = arith.extui %2 : i1 to i32
    %c0_i32_1 = arith.constant 0 : i32
    %4 = arith.cmpi ne, %3, %c0_i32_1 : i32
    scf.if %4 {
      %c0 = arith.constant 0 : index
      %c0_8 = arith.constant 0 : index
      %16 = vector.load %arg3[%c0, %c0_8] : memref<8x32xf32, #tpu.memory_space<vmem>>, vector<1x32xf32>
      %c0_9 = arith.constant 0 : index
      %c0_10 = arith.constant 0 : index
      %17 = vector.load %arg9[%c0_9, %c0_10] : memref<1x32xf32, #tpu.memory_space<vmem>>, vector<1x32xf32>
      tpu.vector_store %arg9[%c0_9, %c0_10], %16 {strides = array<i32>} : memref<1x32xf32, #tpu.memory_space<vmem>>, vector<1x32xf32>,
      %cst = arith.constant 0.000000e+00 : f32
      %18 = vector.broadcast %cst : f32 to vector<1x32xf32>
      %c0_11 = arith.constant 0 : index
      %c0_12 = arith.constant 0 : index
      %19 = vector.load %arg7[%c0_11, %c0_12] : memref<1x32xf32, #tpu.memory_space<vmem>>, vector<1x32xf32>
      tpu.vector_store %arg7[%c0_11, %c0_12], %18 {strides = array<i32>} : memref<1x32xf32, #tpu.memory_space<vmem>>, vector<1x32xf32>,
      %cst_13 = arith.constant 0.000000e+00 : f32
      %20 = vector.broadcast %cst_13 : f32 to vector<1x32xf32>
      %c0_14 = arith.constant 0 : index
      %c0_15 = arith.constant 0 : index
      %21 = vector.load %arg8[%c0_14, %c0_15] : memref<1x32xf32, #tpu.memory_space<vmem>>, vector<1x32xf32>
      tpu.vector_store %arg8[%c0_14, %c0_15], %20 {strides = array<i32>} : memref<1x32xf32, #tpu.memory_space<vmem>>, vector<1x32xf32>,
    } else {
    }
    %c0_i32_2 = arith.constant 0 : i32
    %5 = arith.cmpi eq, %arg1, %c0_i32_2 : i32
    %6 = arith.extui %5 : i1 to i32
    %c0_i32_3 = arith.constant 0 : i32
    %7 = arith.cmpi ne, %6, %c0_i32_3 : i32
    scf.if %7 {
      %c0 = arith.constant 0 : index
      %c0_8 = arith.constant 0 : index
      %16 = vector.load %arg3[%c0, %c0_8] : memref<8x32xf32, #tpu.memory_space<vmem>>, vector<8x32xf32>
      %c0_9 = arith.constant 0 : index
      %c0_10 = arith.constant 0 : index
      %17 = vector.load %arg9[%c0_9, %c0_10] : memref<1x32xf32, #tpu.memory_space<vmem>>, vector<1x32xf32>
      %18 = vector.broadcast %17 : vector<1x32xf32> to vector<8x32xf32>
      %19 = arith.subf %16, %18 : vector<8x32xf32>
      %c0_11 = arith.constant 0 : index
      %c0_12 = arith.constant 0 : index
      %20 = vector.load %arg7[%c0_11, %c0_12] : memref<1x32xf32, #tpu.memory_space<vmem>>, vector<1x32xf32>
      %cst = arith.constant dense<0.000000e+00> : vector<32xf32>
      %21 = vector.multi_reduction <add>, %19, %cst [0] : vector<8x32xf32> to vector<32xf32>
      %22 = vector.shape_cast %21 : vector<32xf32> to vector<1x32xf32>
      %23 = arith.addf %20, %22 : vector<1x32xf32>
      %c0_13 = arith.constant 0 : index
      %c0_14 = arith.constant 0 : index
      %24 = vector.load %arg7[%c0_13, %c0_14] : memref<1x32xf32, #tpu.memory_space<vmem>>, vector<1x32xf32>
      tpu.vector_store %arg7[%c0_13, %c0_14], %23 {strides = array<i32>} : memref<1x32xf32, #tpu.memory_space<vmem>>, vector<1x32xf32>,
      %c0_15 = arith.constant 0 : index
      %c0_16 = arith.constant 0 : index
      %25 = vector.load %arg8[%c0_15, %c0_16] : memref<1x32xf32, #tpu.memory_space<vmem>>, vector<1x32xf32>
      %26 = arith.mulf %19, %19 : vector<8x32xf32>
      %cst_17 = arith.constant dense<0.000000e+00> : vector<32xf32>
      %27 = vector.multi_reduction <add>, %26, %cst_17 [0] : vector<8x32xf32> to vector<32xf32>
      %28 = vector.shape_cast %27 : vector<32xf32> to vector<1x32xf32>
      %29 = arith.addf %25, %28 : vector<1x32xf32>
      %c0_18 = arith.constant 0 : index
      %c0_19 = arith.constant 0 : index
      %30 = vector.load %arg8[%c0_18, %c0_19] : memref<1x32xf32, #tpu.memory_space<vmem>>, vector<1x32xf32>
      tpu.vector_store %arg8[%c0_18, %c0_19], %29 {strides = array<i32>} : memref<1x32xf32, #tpu.memory_space<vmem>>, vector<1x32xf32>,
    } else {
    }
    %c0_i32_4 = arith.constant 0 : i32
    %8 = arith.cmpi eq, %arg1, %c0_i32_4 : i32
    %c0_i32_5 = arith.constant 0 : i32
    %9 = arith.cmpi eq, %arg2, %c0_i32_5 : i32
    %10 = arith.andi %8, %9 : i1
    %11 = arith.extui %10 : i1 to i32
    %c0_i32_6 = arith.constant 0 : i32
    %12 = arith.cmpi ne, %11, %c0_i32_6 : i32
    scf.if %12 {
      %c0 = arith.constant 0 : index
      %c0_8 = arith.constant 0 : index
      %16 = vector.load %arg7[%c0, %c0_8] : memref<1x32xf32, #tpu.memory_space<vmem>>, vector<1x32xf32>
      %cst = arith.constant 1.250000e-01 : f32
      %17 = vector.broadcast %cst : f32 to vector<1x32xf32>
      %18 = arith.mulf %16, %17 : vector<1x32xf32>
      %c0_9 = arith.constant 0 : index
      %c0_10 = arith.constant 0 : index
      %19 = vector.load %arg8[%c0_9, %c0_10] : memref<1x32xf32, #tpu.memory_space<vmem>>, vector<1x32xf32>
      %cst_11 = arith.constant 1.250000e-01 : f32
      %20 = vector.broadcast %cst_11 : f32 to vector<1x32xf32>
      %21 = arith.mulf %19, %20 : vector<1x32xf32>
      %22 = arith.mulf %18, %18 : vector<1x32xf32>
      %23 = arith.subf %21, %22 : vector<1x32xf32>
      %cst_12 = arith.constant 0.000000e+00 : f32
      %24 = vector.broadcast %cst_12 : f32 to vector<1x32xf32>
      %25 = arith.maximumf %23, %24 : vector<1x32xf32>
      %c0_13 = arith.constant 0 : index
      %c0_14 = arith.constant 0 : index
      %26 = vector.load %arg9[%c0_13, %c0_14] : memref<1x32xf32, #tpu.memory_space<vmem>>, vector<1x32xf32>
      %27 = arith.addf %26, %18 : vector<1x32xf32>
      %c0_15 = arith.constant 0 : index
      %c0_16 = arith.constant 0 : index
      %28 = vector.load %arg4[%c0_15, %c0_16] : memref<1x32xf32, #tpu.memory_space<vmem>>, vector<1x32xf32>
      %cst_17 = arith.constant 9.99999974E-6 : f32
      %29 = vector.broadcast %cst_17 : f32 to vector<1x32xf32>
      %30 = arith.addf %25, %29 : vector<1x32xf32>
      %31 = math.rsqrt %30 : vector<1x32xf32>
      %32 = arith.mulf %28, %31 : vector<1x32xf32>
      %c0_18 = arith.constant 0 : index
      %c0_19 = arith.constant 0 : index
      %33 = vector.load %arg7[%c0_18, %c0_19] : memref<1x32xf32, #tpu.memory_space<vmem>>, vector<1x32xf32>
      tpu.vector_store %arg7[%c0_18, %c0_19], %32 {strides = array<i32>} : memref<1x32xf32, #tpu.memory_space<vmem>>, vector<1x32xf32>,
      %c0_20 = arith.constant 0 : index
      %c0_21 = arith.constant 0 : index
      %34 = vector.load %arg5[%c0_20, %c0_21] : memref<1x32xf32, #tpu.memory_space<vmem>>, vector<1x32xf32>
      %35 = arith.mulf %27, %32 : vector<1x32xf32>
      %36 = arith.subf %34, %35 : vector<1x32xf32>
      %c0_22 = arith.constant 0 : index
      %c0_23 = arith.constant 0 : index
      %37 = vector.load %arg8[%c0_22, %c0_23] : memref<1x32xf32, #tpu.memory_space<vmem>>, vector<1x32xf32>
      tpu.vector_store %arg8[%c0_22, %c0_23], %36 {strides = array<i32>} : memref<1x32xf32, #tpu.memory_space<vmem>>, vector<1x32xf32>,
    } else {
    }
    %c1_i32 = arith.constant 1 : i32
    %13 = arith.cmpi eq, %arg1, %c1_i32 : i32
    %14 = arith.extui %13 : i1 to i32
    %c0_i32_7 = arith.constant 0 : i32
    %15 = arith.cmpi ne, %14, %c0_i32_7 : i32
    scf.if %15 {
      %c0 = arith.constant 0 : index
      %c0_8 = arith.constant 0 : index
      %16 = vector.load %arg3[%c0, %c0_8] : memref<8x32xf32, #tpu.memory_space<vmem>>, vector<8x32xf32>
      %c0_9 = arith.constant 0 : index
      %c0_10 = arith.constant 0 : index
      %17 = vector.load %arg7[%c0_9, %c0_10] : memref<1x32xf32, #tpu.memory_space<vmem>>, vector<1x32xf32>
      %18 = vector.broadcast %17 : vector<1x32xf32> to vector<8x32xf32>
      %19 = arith.mulf %16, %18 : vector<8x32xf32>
      %c0_11 = arith.constant 0 : index
      %c0_12 = arith.constant 0 : index
      %20 = vector.load %arg8[%c0_11, %c0_12] : memref<1x32xf32, #tpu.memory_space<vmem>>, vector<1x32xf32>
      %21 = vector.broadcast %20 : vector<1x32xf32> to vector<8x32xf32>
      %22 = arith.addf %19, %21 : vector<8x32xf32>
      %c0_13 = arith.constant 0 : index
      %c0_14 = arith.constant 0 : index
      %23 = vector.load %arg6[%c0_13, %c0_14] : memref<8x32xf32, #tpu.memory_space<vmem>>, vector<8x32xf32>
      tpu.vector_store %arg6[%c0_13, %c0_14], %22 {strides = array<i32>} : memref<8x32xf32, #tpu.memory_space<vmem>>, vector<8x32xf32>,
    } else {
    }
    return
  }
  func.func @transform_0(%arg0: i32, %arg1: i32, %arg2: i32) -> (i32, i32) {
    %c1_i32 = arith.constant 1 : i32
    %0 = arith.subi %c1_i32, %arg1 : i32
    %1 = arith.muli %0, %arg2 : i32
    %c0_i32 = arith.constant 0 : i32
    %2 = arith.subi %c0_i32, %arg2 : i32
    %3 = arith.muli %arg1, %2 : i32
    %4 = arith.addi %1, %3 : i32
    %c0_i32_0 = arith.constant 0 : i32
    return %4, %arg0 : i32, i32
  }
  func.func @transform_1(%arg0: i32, %arg1: i32, %arg2: i32) -> (i32, i32) {
    %c0_i32 = arith.constant 0 : i32
    %c0_i32_0 = arith.constant 0 : i32
    return %c0_i32, %arg0 : i32, i32
  }
  func.func @transform_2(%arg0: i32, %arg1: i32, %arg2: i32) -> (i32, i32) {
    %c0_i32 = arith.constant 0 : i32
    %c0_i32_0 = arith.constant 0 : i32
    return %c0_i32, %arg0 : i32, i32
  }
  func.func @transform_3(%arg0: i32, %arg1: i32, %arg2: i32) -> (i32, i32) {
    %c1_i32 = arith.constant 1 : i32
    %0 = arith.subi %c1_i32, %arg1 : i32
    %c0_i32 = arith.constant 0 : i32
    %1 = arith.muli %0, %c0_i32 : i32
    %c0_i32_0 = arith.constant 0 : i32
    %2 = arith.subi %c0_i32_0, %arg2 : i32
    %3 = arith.muli %arg1, %2 : i32
    %4 = arith.addi %1, %3 : i32
    %c0_i32_1 = arith.constant 0 : i32
    return %4, %arg0 : i32, i32
  }
}

</mosaic_0001>

<bundles_post_ra>
// kernel: tpu_custom_call.1
= control target key start
LH: loop header
LB: loop body
LE: loop exit
PB: predicated region body
PF: predicated region fallthrough
CT: control target
= control target key end

     0   :  { %8 = vsyncpa [#allocation6], 0  ;;  %s758_s0 = inlined_call_operand.hbm [shape: f32[8,32], index: 0, kind: input, shape index: {}]   ;;  %s759_s1 = inlined_call_operand.vmem [shape: f32[1,32], index: 1, kind: input, shape index: {}]   ;;  %s760_s2 = inlined_call_operand.vmem [shape: f32[1,32], index: 2, kind: input, shape index: {}]   ;;  %s761_s3 = inlined_call_operand.hbm [shape: f32[8,32], index: 3, kind: output, shape index: {}]  }
   0x1   :  { %10 = vsyncpa [#allocation6 + $0x1], 0 }
   0x2   :  { %11 = vsyncpa [#allocation7], 0 }
   0x3   :  { %13 = vsyncpa [#allocation7 + $0x1], 0  ;;  %s659_s12 = smov 0   ;;  %s661_s13 = smov 0  }
   0x4   :  { %s663_s14 = smov 0  }
   0x5 LB: > { %s479_s15 = sadd.s32 4294967295, %s634_s14   ;;  %s480_s16 = sadd.s32 4294967294, %s634_s14   ;;  %s634_s14 = sphi %s663_s14, %s19_s14   ;;  %s630_s13 = sphi %s661_s13, %s767_s13   ;;  %s626_s12 = sphi %s659_s12, %s766_s12  }
   0x6   : > { %s34_s17 = sadd.s32 1, %s630_s13  ;;  %p515_p2 = scmp.lt.s32.totalorder %s634_s14, 2 }
   0x7   : > { %p36_p1 = scmp.ge.s32.totalorder %s34_s17, 2  ;;  %p516_p3 = scmp.eq.s32.totalorder %s634_s14, 0 }
   0x8   : > { %s636_s19 = smov [#allocation5]   ;;  %s550_s23 = scalar_lea.hbm %s758_s0, 128 }
   0x9   : > { %s769_s17 = smov (%p36_p1, %s34_s17), 0  ;;  %p682_p4 = pnand %p516_p3, %p515_p2 }
   0xa   : > { %s207_s20 = sshll.u32 %s636_s19, 4  ;;  %p551_p6 = scmp.ne.s32.totalorder %s758_s0, %s550_s23  ;;  %s208_s20 = int_to_ptr.vmem [resolvable:$true] %s207_s20 }
   0xb   : > { %p552_p7 = pneg %p682_p4  ;;  %p557_p10 = scmp.lt.u32.totalorder %s550_s23, %s758_s0 }
   0xd   : > { %p553_p8 = pnand %p552_p7, %p551_p6 }
   0xf   : > { %p554_p9 = pneg %p553_p8 }
  0x11   : > { %p559_p11 = pnand %p557_p10, %p554_p9 }
  0x13   : > { %562 = shalt.err (!%p559_p11)
}
  0x14   : > { %s563_s28 = scalar_lea.vmem %s208_s20, 128  ;;  %s570_s29 = scalar_lea.vmem %s208_s20, 256 }
  0x15   : > { %p564_p12 = scmp.ne.s32.totalorder %s208_s20, %s563_s28  ;;  %p571_p2 = scmp.lt.s32.totalorder %s208_s20, %s208_s20 }
  0x16   : > { %p572_p3 = scmp.lt.s32.totalorder %s570_s29, %s563_s28 }
  0x17   : > { %p566_p13 = pnand %p564_p12, %p552_p7 }
  0x18   : > { %p573_p0 = por %p572_p3, %p571_p2 }
  0x19   : > { %p567_p1 = pneg %p566_p13 }
  0x1b   : > { %p574_p5 = pnand %p573_p0, %p567_p1 }
  0x1d   : > { %577 = shalt.err (!%p574_p5)
}
  0x1e   : > { %510 = dma.hbm_to_vmem [thread:$0]  (!%p682_p4), %s758_s0, 128, %s208_s20, [#allocation6]  }
  0x1f   : > { %p212_p6 = scmp.lt.s32.totalorder %s634_s14, 3  ;;  %p763_p8 = scmp.ge.s32.totalorder %s634_s14, 1 }
  0x21   : > { %p213_p9 = pnand %p763_p8, %p212_p6 }
  0x22   : > { %p517_p7 = scmp.eq.s32.totalorder (!%p213_p9), %s479_s15, 0 }
  0x23   : > { %216 = sbr.rel (%p213_p9) target bundleno = 140 (0x8c), region = 32 }
  0x2a   : > { %617 = dma.done.wait (%p517_p7), [#allocation6], 128  }
  0x2b   : > { %619 = vsyncadd (%p517_p7), [#allocation6], 4294967168  ;;  %p264_p0 = scmp.eq.s32.totalorder %s626_s12, 0 }
  0x2c   : > { %v270_v0 = vld [vmem:[#allocation5] sm:$0x1] (%p264_p0)  ;;  %vm271_vm0 = vcmask (%p264_p0), 253952   ;;  %v637_v1 = vmov (%p264_p0), 0.0  }
  0x2d   : > { %269 = sbr.rel (!%p264_p0) target bundleno = 52 (0x34), region = 40  ;;  %272 = vst.msk [vmem:[#allocation4] sm:$0x1] (%p264_p0), %vm271_vm0, %v270_v0  ;;  %273 = vst.msk [vmem:[#allocation2] sm:$0x1] (%p264_p0), %vm271_vm0, %v637_v1 }
  0x2e   : > { %274 = vst.msk [vmem:[#allocation3] sm:$0x1] (%p264_p0), %vm271_vm0, %v637_v1 }
  0x34 PF: > { %p489_p4 = scmp.ne.s32.totalorder %s626_s12, 0 }
  0x35   : > { %v278_v2 = vld [vmem:[#allocation5] sm:$0xff] (!%p489_p4)  ;;  %v490_v3 = vld [vmem:[#allocation4] ss:$0 sm:$0xff] (!%p489_p4)  ;;  %vm288_vm1 = vcmask (!%p489_p4), 261120   ;;  %v287_v17 = vld [vmem:[#allocation2] sm:$0x1] (!%p489_p4) }
  0x36   : > { %277 = sbr.rel (%p489_p4) target bundleno = 74 (0x4a), region = 44  ;;  %v286_v4 = vsub.f32 (!%p489_p4), %v278_v2, %v490_v3  ;;  %vm297_vm2 = vcmask (!%p489_p4), 253952   ;;  %v299_v20 = vld [vmem:[#allocation3] sm:$0x1] (!%p489_p4) }
  0x38   : > { %v289_v5 = vsel (!%p489_p4), %vm288_vm1, %v286_v4, 0.0  ;;  %v300_v6 = vmul.f32 (!%p489_p4), %v286_v4, %v286_v4 }
  0x39   : > { %v290_v7 = vrot.slane (!%p489_p4), %v289_v5, 4 }
  0x3a   : > { %v301_v8 = vsel (!%p489_p4), %vm288_vm1, %v300_v6, 0.0 }
  0x3b   : > { %v291_v9 = vadd.f32 (!%p489_p4), %v290_v7, %v289_v5  ;;  %v302_v10 = vrot.slane (!%p489_p4), %v301_v8, 4 }
  0x3d   : > { %v292_v11 = vrot.slane %v291_v9, 2  ;;  %v303_v12 = vadd.f32 %v302_v10, %v301_v8 }
  0x3f   : > { %v293_v13 = vadd.f32 %v292_v11, %v291_v9  ;;  %v304_v14 = vrot.slane %v303_v12, 2 }
  0x41   : > { %v294_v15 = vrot.slane %v293_v13, 1  ;;  %v305_v16 = vadd.f32 %v304_v14, %v303_v12 }
  0x43   : > { %v295_v18 = vadd.f32 %v294_v15, %v293_v13  ;;  %v306_v19 = vrot.slane %v305_v16, 1 }
  0x45   : > { %v296_v21 = vadd.f32 %v295_v18, %v287_v17  ;;  %v307_v22 = vadd.f32 %v306_v19, %v305_v16 }
  0x47   : > { %298 = vst.msk [vmem:[#allocation2] sm:$0x1] %vm297_vm2, %v296_v21  ;;  %v308_v23 = vadd.f32 %v307_v22, %v299_v20 }
  0x49   : > { %309 = vst.msk [vmem:[#allocation3] sm:$0x1] %vm297_vm2, %v308_v23 }
  0x4a PF: > { %311 = sbr.rel (!%p264_p0) target bundleno = 107 (0x6b), region = 48  ;;  %v319_v32 = vld [vmem:[#allocation4] sm:$0x1] (%p264_p0)  ;;  %v321_v33 = vld [vmem:[%s759_s1] sm:$0x1] (%p264_p0)  ;;  %vm325_vm3 = vcmask (%p264_p0), 253952  }
  0x4b   : > { %v327_v37 = vld [vmem:[%s760_s2] sm:$0x1] (%p264_p0) }
  0x4e   : > { %v312_v24 = vld [vmem:[#allocation2] sm:$0x1] (%p264_p0) }
  0x4f   : > { %v313_v26 = vmul.f32 (%p264_p0), 0.125, %v312_v24 }
  0x50   : > { %v314_v25 = vld [vmem:[#allocation3] sm:$0x1] (%p264_p0) }
  0x51   : > { %v315_v27 = vmul.f32 0.125, %v314_v25  ;;  %v316_v28 = vmul.f32 %v313_v26, %v313_v26  ;;  %v320_v34 = vadd.f32 %v319_v32, %v313_v26 }
  0x53   : > { %v317_v29 = vsub.f32 %v315_v27, %v316_v28 }
  0x55   : > { %v318_v30 = vmax.f32 %v317_v29, 0.0 }
  0x57   : > { %v322_v31 = vadd.f32 1e-05, %v318_v30 }
  0x59   : > { %548 = vrsqrt.f32 %v322_v31 }
  0x63   : > { %v549_v35 = vpop.eup %548 }
  0x64   : > { %v324_v36 = vmul.f32 %v549_v35, %v321_v33 }
  0x66   : > { %326 = vst.msk [vmem:[#allocation2] sm:$0x1] %vm325_vm3, %v324_v36  ;;  %v328_v38 = vmul.f32 %v324_v36, %v320_v34 }
  0x68   : > { %v329_v39 = vsub.f32 %v327_v37, %v328_v38 }
  0x6a   : > { %330 = vst.msk [vmem:[#allocation3] sm:$0x1] %vm325_vm3, %v329_v39 }
  0x6b PF: > { %p491_p5 = scmp.ne.s32.totalorder %s626_s12, 1 }
  0x6c   : > { %v335_v40 = vld [vmem:[#allocation5] sm:$0xff] (!%p491_p5)  ;;  %vm352_vm4 = vcmask (!%p491_p5), 261120  }
  0x6d   : > { %334 = sbr.rel (%p491_p5) target bundleno = 117 (0x75), region = 52  ;;  %v492_v41 = vld [vmem:[#allocation2] ss:$0 sm:$0xff] (!%p491_p5) }
  0x6e   : > { %v343_v43 = vmul.f32 (!%p491_p5), %v492_v41, %v335_v40 }
  0x71   : > { %v493_v42 = vld [vmem:[#allocation3] ss:$0 sm:$0xff] (!%p491_p5) }
  0x72   : > { %v351_v44 = vadd.f32 (!%p491_p5), %v493_v42, %v343_v43 }
  0x74   : > { %353 = vst.msk [vmem:[#allocation8] sm:$0xff] %vm352_vm4, %v351_v44 }
  0x75 PF: > { %p723_p10 = scmp.eq.s32.totalorder %s479_s15, 1  ;;  %s638_s10 = smov [#allocation8]  }
  0x76   : > { %s371_s11 = sshll.u32 %s638_s10, 4  ;;  %s372_s11 = int_to_ptr.vmem [resolvable:$true] %s371_s11 }
  0x77   : > { %s578_s12 = scalar_lea.vmem %s372_s11, 128  ;;  %s584_s18 = scalar_lea.vmem %s372_s11, 256 }
  0x78   : > { %p579_p11 = scmp.ne.s32.totalorder %s372_s11, %s578_s12  ;;  %p585_p1 = scmp.lt.s32.totalorder %s372_s11, %s372_s11 }
  0x79   : > { %p586_p2 = scmp.lt.s32.totalorder %s584_s18, %s578_s12 }
  0x7a   : > { %p580_p12 = pnand %p579_p11, %p723_p10 }
  0x7b   : > { %p587_p3 = por %p586_p2, %p585_p1 }
  0x7c   : > { %p581_p13 = pneg %p580_p12 }
  0x7e   : > { %p588_p6 = pnand %p587_p3, %p581_p13 }
  0x80   : > { %591 = shalt.err (!%p588_p6)
}
  0x81   : > { %s592_s20 = scalar_lea.hbm %s761_s3, 128 }
  0x82   : > { %p593_p8 = scmp.ne.s32.totalorder %s761_s3, %s592_s20  ;;  %p598_p0 = scmp.lt.u32.totalorder %s592_s20, %s761_s3 }
  0x84   : > { %p594_p9 = pnand %p593_p8, %p723_p10 }
  0x86   : > { %p595_p7 = pneg %p594_p9 }
  0x88   : > { %p600_p4 = pnand %p598_p0, %p595_p7 }
  0x8a   : > { %603 = shalt.err (!%p600_p4)
}
  0x8b   : > { %504 = dma.vmem_to_hbm [thread:$0]  (%p723_p10), %s372_s11, 128, %s761_s3, [#allocation7]  }
  0x8c PF: > { %p520_p5 = scmp.eq.s32.totalorder %s480_s16, 1  ;;  %p765_p11 = scmp.ge.s32.totalorder %s634_s14, 2 }
  0x8e   : > { %p512_p12 = pnand %p520_p5, %p765_p11 }
  0x90   : > { %621 = dma.done.wait (!%p512_p12), [#allocation7], 128  }
  0x91   : > { %623 = vsyncadd (!%p512_p12), [#allocation7], 4294967168  ;;  %s19_s14 = sadd.s32 1, %s634_s14   ;;  %s766_s12 = smov %s630_s13 }
  0x92   : > { %p16_p13 = scmp.ge.s32.totalorder %s19_s14, 4   ;;  %s767_s13 = smov %s769_s17 }
  0x94   :  { %18 = sbr.rel (!%p16_p13) target bundleno = 5 (0x5), region = 99 }
  0x9b   :  { %389 = vsyncpa [#allocation6], 1 }
  0x9c   :  { %391 = vsyncpa [#allocation6 + $0x1], 1 }
  0x9d   :  { %392 = vsyncpa [#allocation7], 1 }
  0x9e   :  { %394 = vsyncpa [#allocation7 + $0x1], 1 }

</bundles_post_ra>
